<compile_context>
chip_gen: v7x
topology: tpu7x:2x2x1
jax: 0.10.0
libtpu: 0.0.40
codegen_flags: <defaults>
</compile_context>

<pallas_src>
import math
import functools

import numpy as np
import jax
import jax.numpy as jnp
from jax.experimental import pallas as pl
from jax.experimental.pallas import tpu as pltpu


def _pos_enc_kernel(seed_ref, const_ref, x_ref, o_ref, pe_ref, *, dropout_p, training):
    """One grid point = one (seq tile, batch element); x/o blocks are (s_blk, d_eff)."""
    s_idx = pl.program_id(0)          # sequence-tile index (megacore "parallel")
    b_idx = pl.program_id(1)          # batch index (innermost; PE tile reused across it)
    s_blk, d_eff = pe_ref.shape

    # The PE tile does not depend on the batch index: compute it once per sequence
    # tile (at b == 0) and cache it in VMEM scratch, already cast to the input dtype.
    @pl.when(b_idx == 0)
    def _():
        row = (jax.lax.broadcasted_iota(jnp.int32, (s_blk, d_eff), 0)
               + s_idx * s_blk).astype(jnp.float32)
        # const_ref[0] = per-lane row multiplier, const_ref[1] = per-lane phase offset
        # (cos(t) == sin(t + pi/2): a single EUP sin, no sin/cos pair + select).
        pe_ref[...] = jnp.sin(row * const_ref[0:1, :] + const_ref[1:2, :]).astype(pe_ref.dtype)

    # Hot path: one elementwise add in the input dtype (PE already cached in x.dtype).
    y = x_ref[...] + pe_ref[...]

    if training and dropout_p > 0.0:
        # Inverted dropout with the TPU hardware PRNG (deterministic per seed/block).
        # TODO(synk): bitwise reproduction of torch's dropout RNG stream is not possible.
        pltpu.prng_seed(seed_ref[0] + s_idx * pl.num_programs(1) + b_idx)
        bits = pltpu.prng_random_bits((s_blk, d_eff))
        if bits.dtype != jnp.uint32:
            bits = pltpu.bitcast(bits, jnp.uint32)
        threshold = np.uint32(min(int(round(dropout_p * 2.0 ** 32)), 2 ** 32 - 1))
        keep = bits >= threshold                       # P(keep) = 1 - dropout_p
        scale = jnp.asarray(1.0 / (1.0 - dropout_p), dtype=y.dtype)
        # Fold the scale into the mask: one select + one multiply per element.
        y = y * jnp.where(keep, scale, jnp.zeros_like(scale))

    o_ref[...] = y.astype(o_ref.dtype)


def _vmem_budget():
    """Chip-derived (per-block budget, kernel vmem limit)."""
    try:
        cap = pltpu.get_tpu_info().vmem_capacity_bytes
    except Exception:
        cap = 128 << 20
    # 8 MiB blocks on 128 MiB chips (v5e/v6e); 4 MiB on 64 MiB chips (v7x).
    block_budget = (8 << 20) if cap >= (128 << 20) else (4 << 20)
    vmem_limit = min(cap // 2, 64 << 20)
    return block_budget, vmem_limit


def _pick_seq_block(S, lane_width, itemsize, budget_bytes, prefer_min_tiles=2):
    """Largest seq tile (packed-sublane multiple dividing S) under a VMEM budget.

    The tile is also capped so the megacore-"parallel" seq axis gets at least
    `prefer_min_tiles` tiles when S is large enough (keeps both v7x cores busy).
    """
    step = 8 * max(1, 4 // max(1, itemsize))   # 8 (f32) / 16 (bf16) / 32 (int8/fp8)
    if S <= step:
        return S
    bytes_per_row = max(1, lane_width * itemsize)
    cand = min(S, max(step, budget_bytes // bytes_per_row))
    if S >= prefer_min_tiles * step:
        cand = min(cand, S // prefer_min_tiles)
    best = None
    d = step
    while d <= cand:
        if S % d == 0:
            best = d
        d += step
    # TODO(synk): if S has no step-multiple divisor under the budget we fall back to a
    # full-sequence tile (a cdiv grid + masked tail block would be more robust).
    return best if best is not None else S


def _pe_constants(D, k):
    """(2, k*D) f32 constants for the lane-folded layout.

    For folded lane f: original column c = f % D, position offset o = f // D, so
    PE[row, f] = sin((row*k + o) * inv_freq[c] + phase[c])
               = sin(row * (k*inv_freq[c]) + (o*inv_freq[c] + phase[c])).
    """
    cols = np.arange(k * D)
    c = cols % D
    off = cols // D
    inv_freq = np.exp((c - (c % 2)).astype(np.float64) * (-math.log(10000.0) / D))
    phase = (c % 2) * (math.pi / 2.0)
    freq_row = k * inv_freq
    phase_all = off * inv_freq + phase
    return np.stack([freq_row, phase_all]).astype(np.float32)


def positional_encoding(x, *, dropout_p=0.1, training=False, seed=0, s_blk=None):
    """Apply sinusoidal positional encoding (+ optional dropout) to x [B, S, D]."""
    B, S, D = x.shape
    itemsize = jnp.dtype(x.dtype).itemsize

    # Lane-dense folding: smallest k dividing S with (k*D) % 128 == 0.
    k = 1
    if D % 128 != 0:
        for cand_k in range(1, S + 1):
            if S % cand_k == 0 and (cand_k * D) % 128 == 0:
                k = cand_k
                break
        # TODO(synk): if no such k exists, the last dim stays non-128-aligned and
        # stores are masked (vst.msk); real model dims (512/768/1024...) need k=1.

    S_eff, d_eff = S // k, k * D
    x_r = x.reshape(B, S_eff, d_eff)

    block_budget, vmem_limit = _vmem_budget()
    if s_blk is None:
        s_blk = _pick_seq_block(S_eff, d_eff, itemsize, block_budget)
    assert S_eff % s_blk == 0, "sequence tile must divide the (folded) sequence length"

    const = jnp.asarray(_pe_constants(D, k))         # (2, d_eff) trace-time constants
    seed_arr = jnp.array([seed], dtype=jnp.int32)

    kernel = functools.partial(_pos_enc_kernel, dropout_p=dropout_p, training=training)

    out = pl.pallas_call(
        kernel,
        out_shape=jax.ShapeDtypeStruct(x_r.shape, x.dtype),
        grid_spec=pltpu.PrefetchScalarGridSpec(
            num_scalar_prefetch=1,                    # seed lands in SMEM
            grid=(S_eff // s_blk, B),                 # batch innermost -> PE tile reuse
            in_specs=[
                pl.BlockSpec((2, d_eff), lambda s, b, seed: (0, 0)),              # PE consts
                pl.BlockSpec((None, s_blk, d_eff), lambda s, b, seed: (b, s, 0)),  # x
            ],
            out_specs=pl.BlockSpec((None, s_blk, d_eff), lambda s, b, seed: (b, s, 0)),
            scratch_shapes=[pltpu.VMEM((s_blk, d_eff), x.dtype)],                  # cached PE
        ),
        compiler_params=pltpu.CompilerParams(
            # Seq-tile axis may be split across TensorCores; batch stays sequential
            # because the cached PE tile is reused across it.
            dimension_semantics=("parallel", "arbitrary"),
            vmem_limit_bytes=vmem_limit,
        ),
    )(seed_arr, const, x_r)
    return out.reshape(B, S, D)


def _reference_pos_enc(x):
    """Pure-JAX reference of the PyTorch forward (eval mode: dropout = identity)."""
    B, S, D = x.shape
    pos = jnp.arange(S, dtype=jnp.float32)[:, None]                    # (S, 1)
    div_term = jnp.exp(jnp.arange(0, D, 2, dtype=jnp.float32) * (-math.log(10000.0) / D))
    pe = jnp.zeros((S, D), jnp.float32)
    pe = pe.at[:, 0::2].set(jnp.sin(pos * div_term))
    pe = pe.at[:, 1::2].set(jnp.cos(pos * div_term))
    return x + pe[None, :, :]


if __name__ == "__main__":
    key = jax.random.PRNGKey(0)
    B, S, D = 2, 8, 32          # batch, seq_len, d_model
    x = jax.random.normal(key, (B, S, D), dtype=jnp.float32)

    out = positional_encoding(x, dropout_p=0.1, training=False)
    out = jax.block_until_ready(out)

    ref = _reference_pos_enc(x)
    assert out.shape == x.shape and out.dtype == x.dtype
    assert jnp.allclose(out, ref, atol=2e-5, rtol=1e-5), "mismatch vs reference"

    print("KERNEL_OK")
</pallas_src>

<mosaic_0001>
module attributes {stable_mosaic.version = 11 : i64} {
  func.func @_pos_enc_kernel(%arg0: i32, %arg1: i32, %arg2: memref<1xi32, #tpu.memory_space<smem>>, %arg3: memref<2x128xf32, #tpu.memory_space<vmem>>, %arg4: memref<1x2x128xf32, #tpu.memory_space<vmem>>, %arg5: memref<1x2x128xf32, #tpu.memory_space<vmem>>, %arg6: memref<2x128xf32, #tpu.memory_space<vmem>>) attributes {dimension_semantics = [#tpu.dimension_semantics<parallel>, #tpu.dimension_semantics<arbitrary>], iteration_bounds = array<i64: 1, 2>, scalar_prefetch = 1 : i64, scratch_operands = 1 : i64, tpu.core_type = #tpu.core_type<tc>, window_params = [{pipeline_mode = #tpu.pipeline_mode<synchronous>, transform_indices = @transform_0, window_bounds = array<i64: 2, 128>}, {transform_indices = @transform_1, window_bounds = array<i64: 1, 2, 128>}, {transform_indices = @transform_2, window_bounds = array<i64: 1, 2, 128>}]} {
    %c0_i32 = arith.constant 0 : i32
    %0 = arith.cmpi eq, %arg1, %c0_i32 : i32
    %1 = arith.extui %0 : i1 to i32
    %c0_i32_0 = arith.constant 0 : i32
    %2 = arith.cmpi ne, %1, %c0_i32_0 : i32
    scf.if %2 {
      %10 = tpu.iota {dimensions = array<i32: 0>} : vector<2x128xi32>
      %c2_i32 = arith.constant 2 : i32
      %11 = arith.muli %arg0, %c2_i32 : i32
      %12 = vector.broadcast %11 : i32 to vector<2x128xi32>
      %13 = arith.addi %10, %12 : vector<2x128xi32>
      %14 = arith.sitofp %13 : vector<2x128xi32> to vector<2x128xf32>
      %c0_8 = arith.constant 0 : index
      %c0_9 = arith.constant 0 : index
      %15 = vector.load %arg3[%c0_8, %c0_9] : memref<2x128xf32, #tpu.memory_space<vmem>>, vector<1x128xf32>
      %16 = vector.broadcast %15 : vector<1x128xf32> to vector<2x128xf32>
      %17 = arith.mulf %14, %16 : vector<2x128xf32>
      %c1 = arith.constant 1 : index
      %c0_10 = arith.constant 0 : index
      %18 = vector.load %arg3[%c1, %c0_10] : memref<2x128xf32, #tpu.memory_space<vmem>>, vector<1x128xf32>
      %19 = vector.broadcast %18 : vector<1x128xf32> to vector<2x128xf32>
      %20 = arith.addf %17, %19 : vector<2x128xf32>
      %21 = math.sin %20 : vector<2x128xf32>
      %c0_11 = arith.constant 0 : index
      %c0_12 = arith.constant 0 : index
      %22 = vector.load %arg6[%c0_11, %c0_12] : memref<2x128xf32, #tpu.memory_space<vmem>>, vector<2x128xf32>
      tpu.vector_store %arg6[%c0_11, %c0_12], %21 {strides = array<i32>} : memref<2x128xf32, #tpu.memory_space<vmem>>, vector<2x128xf32>,
    } else {
    }
    %c0 = arith.constant 0 : index
    %c0_1 = arith.constant 0 : index
    %c0_2 = arith.constant 0 : index
    %3 = vector.load %arg4[%c0, %c0_1, %c0_2] : memref<1x2x128xf32, #tpu.memory_space<vmem>>, vector<1x2x128xf32>
    %4 = vector.shape_cast %3 : vector<1x2x128xf32> to vector<2x128xf32>
    %c0_3 = arith.constant 0 : index
    %c0_4 = arith.constant 0 : index
    %5 = vector.load %arg6[%c0_3, %c0_4] : memref<2x128xf32, #tpu.memory_space<vmem>>, vector<2x128xf32>
    %6 = arith.addf %4, %5 : vector<2x128xf32>
    %c0_5 = arith.constant 0 : index
    %c0_6 = arith.constant 0 : index
    %c0_7 = arith.constant 0 : index
    %7 = vector.load %arg5[%c0_5, %c0_6, %c0_7] : memref<1x2x128xf32, #tpu.memory_space<vmem>>, vector<1x2x128xf32>
    %8 = vector.shape_cast %7 : vector<1x2x128xf32> to vector<2x128xf32>
    %9 = vector.shape_cast %6 : vector<2x128xf32> to vector<1x2x128xf32>
    tpu.vector_store %arg5[%c0_5, %c0_6, %c0_7], %9 {strides = array<i32>} : memref<1x2x128xf32, #tpu.memory_space<vmem>>, vector<1x2x128xf32>,
    return
  }
  func.func @transform_0(%arg0: i32, %arg1: i32, %arg2: memref<1xi32, #tpu.memory_space<smem>>) -> (i32, i32) {
    %c0_i32 = arith.constant 0 : i32
    %c0_i32_0 = arith.constant 0 : i32
    %c0_i32_1 = arith.constant 0 : i32
    return %c0_i32, %c0_i32_0 : i32, i32
  }
  func.func @transform_1(%arg0: i32, %arg1: i32, %arg2: memref<1xi32, #tpu.memory_space<smem>>) -> (i32, i32, i32) {
    %c0_i32 = arith.constant 0 : i32
    %c0_i32_0 = arith.constant 0 : i32
    return %arg1, %arg0, %c0_i32 : i32, i32, i32
  }
  func.func @transform_2(%arg0: i32, %arg1: i32, %arg2: memref<1xi32, #tpu.memory_space<smem>>) -> (i32, i32, i32) {
    %c0_i32 = arith.constant 0 : i32
    %c0_i32_0 = arith.constant 0 : i32
    return %arg1, %arg0, %c0_i32 : i32, i32, i32
  }
}

</mosaic_0001>

<bundles_post_ra>
// kernel: tpu_custom_call.1
= control target key start
LH: loop header
LB: loop body
LE: loop exit
PB: predicated region body
PF: predicated region fallthrough
CT: control target
= control target key end

     0   :  { %9 = vsyncpa [#allocation6], 0  ;;  %s958_s0 = inlined_call_operand.<no memory space> [shape: s32[1], index: 0, kind: input, shape index: {}]   ;;  %s959_s1 = inlined_call_operand.hbm [shape: f32[2,128], index: 1, kind: input, shape index: {}]   ;;  %s960_s2 = inlined_call_operand.hbm [shape: f32[2,2,128], index: 2, kind: input, shape index: {}]   ;;  %s961_s3 = inlined_call_operand.hbm [shape: f32[2,2,128], index: 3, kind: output, shape index: {}]  }
   0x1   :  { %10 = vsyncpa [#allocation9], 0 }
   0x2   :  { %12 = vsyncpa [#allocation9 + $0x1], 0 }
   0x3   :  { %13 = vsyncpa [#allocation7], 0 }
   0x4   :  { %15 = vsyncpa [#allocation7 + $0x1], 0  ;;  %s713_s12 = smov 0   ;;  %s715_s13 = smov 0  }
   0x5   :  { %s717_s14 = smov 0   ;;  %s719_s0 = smov 0  }
   0x6   :  { %s721_s15 = smov 0   ;;  %s723_s16 = smov 0  }
   0x7 LB: > { %s429_s17 = sadd.s32 4294967295, %s682_s16   ;;  %s430_s18 = sadd.s32 4294967294, %s682_s16   ;;  %s682_s16 = sphi %s723_s16, %s21_s16   ;;  %s678_s15 = sphi %s721_s15, %s986_s15   ;;  %s674_s0 = sphi %s719_s0, %s985_s0   ;;  %s670_s14 = sphi %s717_s14, %s984_s14   ;;  %s666_s13 = sphi %s715_s13, %s983_s13   ;;  %s662_s12 = sphi %s713_s12, %s982_s12  }
   0x8   : > { %p76_p0 = scmp.ne.s32.totalorder %s666_s13, %s662_s12  ;;  %p747_p1 = scmp.eq.s32.totalorder %s429_s17, 0 }
   0x9   : > { %p751_p2 = scmp.eq.s32.totalorder %s429_s17, 1  ;;  %p108_p3 = scmp.eq.s32.totalorder %s430_s18, 1 }
   0xa   : > { %s966_s19 = scalar_select %p747_p1, 1, 0 }
   0xb   : > { %s967_s20 = scalar_select %p751_p2, 1, 0 }
   0xc   : > { %p757_p4 = por %p747_p1, %p76_p0  ;;  %p431_p5 = scmp.ge.s32.totalorder %s682_s16, 1 }
   0xd   : > { %p762_p6 = por %p108_p3, %p76_p0  ;;  %p115_p7 = scmp.lt.s32.totalorder %s682_s16, 3 }
   0xe   : > { %s968_s21 = scalar_select %p757_p4, 1, 0 }
   0xf   : > { %s969_s22 = scalar_select %p762_p6, 1, 0 }
  0x10   : > { %p767_p8 = pnand %p431_p5, %p115_p7  ;;  %s684_s24 = smov [#allocation5]  }
  0x11   : > { %s128_s25 = sshll.u32 %s684_s24, 4  ;;  %s30_s27 = sadd.s32 1, %s678_s15  ;;  %s129_s25 = int_to_ptr.vmem [resolvable:$true] %s128_s25 }
  0x12   : > { %s970_s23 = scalar_select %p767_p8, 1, 0 }
  0x13   : > { %p463_p10 = pneg %p767_p8  ;;  %s63_s28 = sadd.s32 1, %s670_s14 }
  0x14   : > { %p782_p12 = scmp.ge.s32.totalorder %s30_s27, 2  ;;  %s538_s5 = scalar_lea.hbm %s959_s1, 32 }
  0x15   : > { %p776_p11 = pnand %p463_p10, %p747_p1  ;;  %p539_p13 = scmp.ne.s32.totalorder %s959_s1, %s538_s5 }
  0x16   : > { %s972_s29 = scalar_select %p782_p12, 1, 0 }
  0x17   : > { %p540_p0 = pneg %p776_p11  ;;  %p545_p7 = scmp.lt.u32.totalorder %s538_s5, %s959_s1 }
  0x19   : > { %p541_p3 = pnand %p540_p0, %p539_p13 }
  0x1b   : > { %p542_p5 = pneg %p541_p3 }
  0x1d   : > { %p547_p10 = pnand %p545_p7, %p542_p5 }
  0x1f   : > { %550 = shalt.err (!%p547_p10)
}
  0x20   : > { %s551_s10 = scalar_lea.vmem %s129_s25, 32  ;;  %p559_p1 = scmp.lt.s32.totalorder %s129_s25, %s129_s25 }
  0x21   : > { %p552_p9 = scmp.ne.s32.totalorder %s129_s25, %s551_s10  ;;  %p560_p8 = scmp.lt.s32.totalorder %s551_s10, %s551_s10 }
  0x23   : > { %p554_p6 = pnand %p552_p9, %p540_p0  ;;  %p561_p2 = por %p560_p8, %p559_p1 }
  0x25   : > { %p555_p4 = pneg %p554_p6 }
  0x27   : > { %p562_p12 = pnand %p561_p2, %p555_p4 }
  0x29   : > { %565 = shalt.err (!%p562_p12)
}
  0x2a   : > { %466 = dma.hbm_to_vmem [thread:$0]  (!%p776_p11), %s959_s1, 32, %s129_s25, [#allocation6]  }
  0x2b   : > { %p973_p1 = scmp.ne.s32.totalorder %s972_s29, 0  ;;  %p70_p2 = scmp.ne.s32.totalorder %s670_s14, %s666_s13 }
  0x2c   : > { %p71_p4 = scmp.eq.s32.totalorder %s682_s16, 0  ;;  %p476_p6 = scmp.lt.s32.totalorder %s682_s16, 2 }
  0x2d   : > { %s988_s27 = smov (%p973_p1, %s30_s27), 0  ;;  %p974_p12 = scmp.ne.s32.totalorder %s967_s20, 0 }
  0x2e   : > { %s58_s18 = ssub.s32 %s678_s15, %s988_s27  ;;  %p72_p9 = por %p71_p4, %p70_p2 }
  0x2f   : > { %p61_p8 = scmp.eq.s32.totalorder %s58_s18, 0  ;;  %p814_p13 = por %p974_p12, %p70_p2 }
  0x30   : > { %s139_s26 = sand.u32 1, %s670_s14   ;;  %s435_s29 = sshll.u32 %s678_s15, 5 }
  0x31   : > { %s822_s30 = scalar_select %p61_p8, %s670_s14, %s63_s28  }
  0x32   : > { %s434_s25 = sshll.u32 %s139_s26, 1  ;;  %s828_s6 = scalar_lea.hbm %s960_s2, %s435_s29 }
  0x33   : > { %s143_s20 = scalar_lea.vmem [#allocation8], %s434_s25  ;;  %p832_p11 = pnand %p476_p6, %p72_p9 }
  0x34   : > { %s151_s7 = sshll.u32 %s143_s20, 4  ;;  %s140_s28 = scalar_lea.sflag [#allocation9], %s139_s26  ;;  %s830_s7 = int_to_ptr.vmem [resolvable:$true] %s151_s7 }
  0x35   : > { %s566_s9 = scalar_lea.hbm %s828_s6, 32  ;;  %p568_p3 = pneg %p832_p11 }
  0x36   : > { %p567_p0 = scmp.ne.s32.totalorder %s828_s6, %s566_s9  ;;  %s571_s17 = scalar_lea.hbm %s960_s2, 64 }
  0x37   : > { %p572_p10 = scmp.lt.u32.totalorder %s828_s6, %s960_s2  ;;  %p573_p1 = scmp.lt.u32.totalorder %s571_s17, %s566_s9 }
  0x38   : > { %p569_p5 = pnand %p568_p3, %p567_p0  ;;  %p575_p4 = scmp.lt.u32.totalorder %s566_s9, %s828_s6 }
  0x39   : > { %p574_p2 = por %p573_p1, %p572_p10 }
  0x3a   : > { %p570_p7 = pneg %p569_p5 }
  0x3b   : > { %p576_p6 = por %p575_p4, %p574_p2 }
  0x3d   : > { %p577_p8 = pnand %p576_p6, %p570_p7 }
  0x3f   : > { %580 = shalt.err (!%p577_p8)
}
  0x40   : > { %s581_s26 = scalar_lea.vmem %s830_s7, 32  ;;  %s685_s29 = smov [#allocation8]  }
  0x41   : > { %p582_p9 = scmp.ne.s32.totalorder %s830_s7, %s581_s26  ;;  %s586_s4 = sshll.u32 %s685_s29, 4  ;;  %s587_s4 = int_to_ptr.vmem [resolvable:$false] %s586_s4 }
  0x42   : > { %s588_s5 = scalar_lea.vmem %s587_s4, 64  ;;  %p589_p5 = scmp.lt.s32.totalorder %s830_s7, %s587_s4 }
  0x43   : > { %p584_p12 = pnand %p582_p9, %p568_p3  ;;  %p590_p10 = scmp.lt.s32.totalorder %s588_s5, %s581_s26 }
  0x45   : > { %p585_p0 = pneg %p584_p12  ;;  %p591_p1 = por %p590_p10, %p589_p5 }
  0x47   : > { %p592_p2 = pnand %p591_p1, %p585_p0 }
  0x49   : > { %595 = shalt.err (!%p592_p2)
}
  0x4a   : > { %470 = dma.hbm_to_vmem [thread:$0]  (!%p832_p11), %s828_s6, 32, %s830_s7, %s140_s28  }
  0x4b   : > { %p977_p7 = scmp.ne.s32.totalorder %s970_s23, 0 }
  0x4c   : > { %p978_p3 = scmp.ne.s32.totalorder (!%p977_p7), %s966_s19, 0 }
  0x4d   : > { %160 = sbr.rel (%p977_p7) target bundleno = 205 (0xcd), region = 28 }
  0x54   : > { %649 = dma.done.wait (%p978_p3), [#allocation6], 32  }
  0x55   : > { %651 = vsyncadd (%p978_p3), [#allocation6], 4294967264  ;;  %s868_s20 = sand.u32 1, %s666_s13   ;;  %p979_p11 = scmp.ne.s32.totalorder %s968_s21, 0 }
  0x56   : > { %s438_s9 = sshll.u32 %s868_s20, 1  ;;  %s167_s8 = scalar_lea.sflag [#allocation9], %s868_s20 }
  0x57   : > { %s872_s10 = scalar_lea.vmem [#allocation8], %s438_s9 }
  0x58   : > { %653 = dma.done.wait (%p979_p11), %s167_s8, 32  }
  0x59   : > { %655 = vsyncadd (%p979_p11), %s167_s8, 4294967264  ;;  %s878_s23 = scalar_lea.vmem [#allocation10], %s438_s9  ;;  %p440_p4 = scmp.ne.s32.totalorder %s674_s0, 0 }
  0x5a   : > { %v195_v0 = vlaneseq (!%p440_p4)  ;;  %v441_v2 = vld [vmem:[#allocation5] ss:$0 sm:$0xff] (!%p440_p4)  ;;  %v442_v4 = vld [vmem:[#allocation5 + $0x1] ss:$0 sm:$0xff] (!%p440_p4)  ;;  %v686_v18 = vmov (!%p440_p4), 683565275  }
  0x5b   : > { %194 = sbr.rel (%p440_p4) target bundleno = 181 (0xb5), region = 40  ;;  %v687_v20 = vmov (!%p440_p4), 2475754826   ;;  %v688_v22 = vmov (!%p440_p4), 2131351028  }
  0x5c   : > { %v196_v1 = vshrl.u32 (!%p440_p4), %v195_v0, 7  ;;  %v689_v24 = vmov (!%p440_p4), 2102212464   ;;  %v690_v26 = vmov (!%p440_p4), 920167782  }
  0x5d   : > { %v691_v33 = vmov (!%p440_p4), 1326507024  }
  0x5e   : > { %v200_v3 = vcvt.s32.f32 (!%p440_p4), %v196_v1 }
  0x60   : > { %v206_v5 = vmul.f32 (!%p440_p4), %v441_v2, %v200_v3 }
  0x62   : > { %v881_v6 = vadd.f32 %v442_v4, %v206_v5 }
  0x64   : > { %v216_v7 = vand.u32 2139095040, %v881_v6  ;;  %v213_v9 = vand.u32 2147483647, %v881_v6  ;;  %vm215_vm7 = vcmp.lt.s32.totalorder %v881_v6, 0  ;;  %vm305_vm12 = vweird.f32 %v881_v6 }
  0x66   : > { %v217_v8 = vshrl.u32 %v216_v7, 23  ;;  %v220_v12 = vand.u32 8388607, %v213_v9  ;;  %vm214_vm8 = vcmp.le.f32.partialorder %v213_v9, 0.7853982 }
  0x68   : > { %v443_v10 = vadd.s32 4294967169, %v217_v8  ;;  %v221_v15 = vor.u32 8388608, %v220_v12 }
  0x6a   : > { %v223_v11 = vadd.s32 1, %v443_v10  ;;  %v261_v35 = vshll.u32 %v221_v15, 8 }
  0x6c   : > { %vm224_vm0 = vcmp.gt.s32.totalorder %v223_v11, 0 }
  0x6d   : > { %v225_v13 = vsel %vm224_vm0, %v223_v11, 0 }
  0x6e   : > { %v227_v14 = vand.u32 31, %v225_v13  ;;  %v226_v16 = vshrl.u32 %v225_v13, 5 }
  0x70   : > { %v228_v17 = vsub.s32 32, %v227_v14  ;;  %v230_v19 = vshll.u32 %v686_v18, %v227_v14  ;;  %v233_v21 = vshll.u32 %v687_v20, %v227_v14  ;;  %v236_v23 = vshll.u32 %v688_v22, %v227_v14 }
  0x71   : > { %v239_v25 = vshll.u32 %v689_v24, %v227_v14  ;;  %v242_v27 = vshll.u32 %v690_v26, %v227_v14  ;;  %vm245_vm1 = vcmp.lt.s32.totalorder %v226_v16, 1  ;;  %vm248_vm2 = vcmp.lt.s32.totalorder %v226_v16, 4 }
  0x72   : > { %v229_v28 = vshrl.u32 %v686_v18, %v228_v17  ;;  %v231_v29 = vshrl.u32 %v687_v20, %v228_v17  ;;  %v234_v30 = vshrl.u32 %v688_v22, %v228_v17  ;;  %v237_v31 = vshrl.u32 %v689_v24, %v228_v17 }
  0x73   : > { %v240_v32 = vshrl.u32 %v690_v26, %v228_v17  ;;  %v243_v34 = vshrl.u32 %v691_v33, %v228_v17  ;;  %vm246_vm3 = vcmp.lt.s32.totalorder %v226_v16, 2  ;;  %vm247_vm4 = vcmp.lt.s32.totalorder %v226_v16, 3 }
  0x74   : > { %v232_v36 = vor.u32 %v231_v29, %v230_v19  ;;  %v235_v37 = vor.u32 %v234_v30, %v233_v21  ;;  %v238_v38 = vor.u32 %v237_v31, %v236_v23 }
  0x75   : > { %v241_v39 = vor.u32 %v240_v32, %v239_v25  ;;  %v244_v40 = vor.u32 %v243_v34, %v242_v27 }
  0x76   : > { %v249_v41 = vsel %vm245_vm1, %v229_v28, %v232_v36  ;;  %v250_v42 = vsel %vm248_vm2, %v238_v38, 2102212464  ;;  %v253_v43 = vsel %vm245_vm1, %v232_v36, %v235_v37  ;;  %v257_v44 = vsel %vm245_vm1, %v235_v37, %v238_v38 }
  0x77   : > { %v251_v45 = vsel %vm247_vm4, %v235_v37, %v250_v42  ;;  %v254_v46 = vsel %vm248_vm2, %v241_v39, 920167782  ;;  %v258_v47 = vsel %vm248_vm2, %v244_v40, 1326507024 }
  0x78   : > { %v255_v48 = vsel %vm247_vm4, %v238_v38, %v254_v46  ;;  %v259_v49 = vsel %vm247_vm4, %v241_v39, %v258_v47  ;;  %v252_v50 = vsel %vm246_vm3, %v249_v41, %v251_v45 }
  0x79   : > { %v256_v51 = vsel %vm246_vm3, %v253_v43, %v255_v48  ;;  %v260_v52 = vsel %vm246_vm3, %v257_v44, %v259_v49  ;;  %v268_v57 = vmul.u32 %v261_v35, %v252_v50 }
  0x7a   : > { %v887_v53 = vmul.u32.u64.low %v261_v35, %v260_v52  ;;  %v888_v54 = vmul.u32.u64.high %v261_v35, %v260_v52, %v887_v53  ;;  %v890_v55 = vmul.u32.u64.low %v261_v35, %v256_v51  ;;  %v891_v56 = vmul.u32.u64.high %v261_v35, %v256_v51, %v890_v55 }
  0x7c   : > { %vm270_vm5 = vc.u32 %v888_v54, %v890_v55  ;;  %v271_v58 = vadd.s32 1, %v891_v56  ;;  %v269_v5 = vadd.s32 %v890_v55, %v888_v54 }
  0x7e   : > { %v272_v59 = vsel %vm270_vm5, %v271_v58, %v891_v56 }
  0x7f   : > { %v273_v60 = vadd.s32 %v272_v59, %v268_v57 }
  0x81   : > { %v274_v61 = vadd.s32 536870912, %v273_v60 }
  0x83   : > { %v275_v62 = vshrl.u32 %v274_v61, 30 }
  0x85   : > { %v276_v63 = vshll.u32 %v275_v62, 30  ;;  %v299_v19 = vsub.s32 4, %v275_v62 }
  0x87   : > { %v277_v0 = vsub.s32 %v273_v60, %v276_v63  ;;  %v300_v22 = vsel %vm215_vm7, %v299_v19, %v275_v62 }
  0x88   : > { %v302_v25 = vsel %vm214_vm8, 0, %v300_v22 }
  0x89   : > { %v279_v1 = vsub.s32 0, %v277_v0  ;;  %v306_v26 = vadd.s32 3, %v302_v25 }
  0x8b   : > { %v444_v2 = vmin.u32 %v279_v1, %v277_v0  ;;  %v307_v27 = vand.u32 3, %v306_v26 }
  0x8d   : > { %v281_v3 = vclz %v444_v2  ;;  %vm312_vm9 = vcmp.eq.s32.totalorder %v307_v27, 2  ;;  %vm309_vm10 = vcmp.eq.s32.totalorder %v307_v27, 0  ;;  %vm308_vm11 = vcmp.lt.s32.totalorder %v307_v27, 2 }
  0x8f   : > { %v445_v4 = vadd.s32 4294967294, %v281_v3 }
  0x91   : > { %vm446_vm6 = vcmp.lt.s32.totalorder %v445_v4, 0 }
  0x92   : > { %v284_v7 = vsel %vm446_vm6, 0, %v445_v4 }
  0x93   : > { %v285_v8 = vsub.s32 32, %v284_v7  ;;  %v286_v10 = vshll.u32 %v277_v0, %v284_v7  ;;  %v289_v11 = vsub.s32 4294967266, %v284_v7 }
  0x95   : > { %v287_v12 = vshrl.u32 %v269_v5, %v285_v8  ;;  %v290_v13 = vadd.s32 127, %v289_v11 }
  0x97   : > { %v288_v14 = vor.u32 %v287_v12, %v286_v10  ;;  %v291_v15 = vshll.u32 %v290_v13, 23 }
  0x99   : > { %v292_v16 = vor.u32 4788187, %v291_v15  ;;  %v295_v17 = vcvt.s32.f32 %v288_v14 }
  0x9b   : > { %v293_v18 = vand.u32 2147483647, %v292_v16 }
  0x9d   : > { %v296_v20 = vmul.f32 %v295_v17, %v293_v18 }
  0x9f   : > { %v297_v21 = vxor.u32 2147483648, %v296_v20 }
  0xa1   : > { %v298_v23 = vsel %vm215_vm7, %v297_v21, %v296_v20 }
  0xa2   : > { %v301_v24 = vsel %vm214_vm8, %v881_v6, %v298_v23 }
  0xa3   : > { %534 = vcosq.f32 %v301_v24 }
  0xa4   : > { %536 = vsinq.f32 %v301_v24 }
  0xad   : > { %v535_v28 = vpop.eup %534 }
  0xae   : > { %v537_v29 = vpop.eup %536  ;;  %v313_v30 = vxor.u32 2147483648, %v535_v28 }
  0xaf   : > { %v310_v31 = vxor.u32 2147483648, %v537_v29 }
  0xb0   : > { %v314_v9 = vsel %vm312_vm9, %v313_v30, %v537_v29 }
  0xb1   : > { %v311_v32 = vsel %vm309_vm10, %v535_v28, %v310_v31 }
  0xb2   : > { %v315_v33 = vsel %vm308_vm11, %v311_v32, %v314_v9 }
  0xb3   : > { %v316_v34 = vsel %vm305_vm12, nan, %v315_v33 }
  0xb4   : > { %317 = vst [vmem:[#allocation2] sm:$0x3] %v316_v34 }
  0xb5 PF: > { %v318_v35 = vld [vmem:[%s872_s10] sm:$0x3]  ;;  %s448_s19 = sshll.u32 %s674_s0, 5  ;;  %s337_s28 = sshll.u32 %s878_s23, 4  ;;  %s910_s28 = int_to_ptr.vmem [resolvable:$true] %s337_s28 }
  0xb6   : > { %s907_s7 = scalar_lea.hbm %s961_s3, %s448_s19  ;;  %s323_s11 = scalar_lea.sflag [#allocation7], %s868_s20 }
  0xb7   : > { %s596_s17 = scalar_lea.vmem %s910_s28, 32  ;;  %s692_s0 = smov [#allocation10]  }
  0xb8   : > { %p597_p6 = scmp.ne.s32.totalorder %s910_s28, %s596_s17  ;;  %s600_s18 = sshll.u32 %s692_s0, 4  ;;  %s601_s18 = int_to_ptr.vmem [resolvable:$false] %s600_s18 }
  0xb9   : > { %s602_s25 = scalar_lea.vmem %s601_s18, 64  ;;  %p603_p12 = scmp.lt.s32.totalorder %s910_s28, %s601_s18 }
  0xba   : > { %p598_p8 = pnand %p597_p6, %p814_p13  ;;  %p604_p0 = scmp.lt.s32.totalorder %s602_s25, %s596_s17 }
  0xbb   : > { %v319_v36 = vld [vmem:[#allocation2] sm:$0x3] }
  0xbc   : > { %v320_v37 = vadd.f32 %v319_v36, %v318_v35  ;;  %p599_p9 = pneg %p598_p8  ;;  %p605_p5 = por %p604_p0, %p603_p12 }
  0xbe   : > { %321 = vst [vmem:[%s878_s23] sm:$0x3] %v320_v37  ;;  %p606_p10 = pnand %p605_p5, %p599_p9 }
  0xc0   : > { %609 = shalt.err (!%p606_p10)
}
  0xc1   : > { %s610_s26 = scalar_lea.hbm %s907_s7, 32  ;;  %s614_s5 = scalar_lea.hbm %s961_s3, 64 }
  0xc2   : > { %p611_p1 = scmp.ne.s32.totalorder %s907_s7, %s610_s26  ;;  %p615_p3 = scmp.lt.u32.totalorder %s907_s7, %s961_s3 }
  0xc3   : > { %p616_p11 = scmp.lt.u32.totalorder %s614_s5, %s610_s26  ;;  %p618_p6 = scmp.lt.u32.totalorder %s610_s26, %s907_s7 }
  0xc4   : > { %p612_p2 = pnand %p611_p1, %p814_p13 }
  0xc5   : > { %p617_p4 = por %p616_p11, %p615_p3 }
  0xc6   : > { %p613_p7 = pneg %p612_p2 }
  0xc7   : > { %p619_p8 = por %p618_p6, %p617_p4 }
  0xc9   : > { %p620_p9 = pnand %p619_p8, %p613_p7 }
  0xcb   : > { %623 = shalt.err (!%p620_p9)
}
  0xcc   : > { %461 = dma.vmem_to_hbm [thread:$0]  (%p814_p13), %s910_s28, 32, %s907_s7, %s323_s11  }
  0xcd PF: > { %s349_s8 = sand.u32 1, %s662_s12   ;;  %p980_p12 = scmp.ne.s32.totalorder %s969_s22, 0 }
  0xce   : > { %p981_p0 = scmp.ge.s32.totalorder %s682_s16, 2  ;;  %s350_s10 = scalar_lea.sflag [#allocation7], %s349_s8 }
  0xd0   : > { %p472_p5 = pnand %p981_p0, %p980_p12 }
  0xd2   : > { %657 = dma.done.wait (!%p472_p5), %s350_s10, 32  }
  0xd3   : > { %659 = vsyncadd (!%p472_p5), %s350_s10, 4294967264  ;;  %s21_s16 = sadd.s32 1, %s682_s16   ;;  %s982_s12 = smov %s666_s13 }
  0xd4   : > { %p18_p10 = scmp.ge.s32.totalorder %s21_s16, 4   ;;  %s983_s13 = smov %s670_s14 }
  0xd5   : > { %s984_s14 = smov %s822_s30  ;;  %s985_s0 = smov %s678_s15 }
  0xd6   : > { %s986_s15 = smov %s988_s27  ;;  %20 = sbr.rel (!%p18_p10) target bundleno = 7 (0x7), region = 82 }
  0xdd   :  { %355 = vsyncpa [#allocation6], 1 }
  0xde   :  { %357 = vsyncpa [#allocation6 + $0x1], 1 }
  0xdf   :  { %358 = vsyncpa [#allocation9], 1 }
  0xe0   :  { %360 = vsyncpa [#allocation9 + $0x1], 1 }
  0xe1   :  { %361 = vsyncpa [#allocation7], 1 }
  0xe2   :  { %363 = vsyncpa [#allocation7 + $0x1], 1 }

</bundles_post_ra>
